<compile_context>
chip_gen: v6e
topology: v6e:2x2x1
jax: 0.10.0
libtpu: 0.0.40
codegen_flags: <defaults>
</compile_context>

<pallas_src>
import math

import jax
import jax.numpy as jnp
from jax.experimental import pallas as pl
from jax.experimental.pallas import tpu as pltpu


# --------------------------------------------------------------------------- #
# Variant 1 (preferred when a materialized copy is required):
# single whole-array HBM->HBM DMA -- no VMEM staging, no grid-step overhead.
# --------------------------------------------------------------------------- #
def _dma_flatten_kernel(x_hbm, o_hbm, sem):
    cp = pltpu.make_async_copy(x_hbm, o_hbm, sem)
    cp.start()
    cp.wait()


def pallas_flatten_dma(x: jnp.ndarray) -> jnp.ndarray:
    """Flatten (B, *obs) -> (B, F) via one DMA-engine HBM->HBM copy."""
    B = x.shape[0]
    F = int(math.prod(x.shape[1:]))
    itemsize = jnp.dtype(x.dtype).itemsize
    x2 = jnp.reshape(x, (B, F))  # metadata-only for row-major contiguous input
    return pl.pallas_call(
        _dma_flatten_kernel,
        out_shape=jax.ShapeDtypeStruct((B, F), x.dtype),
        in_specs=[pl.BlockSpec(memory_space=pl.ANY)],
        out_specs=pl.BlockSpec(memory_space=pl.ANY),
        scratch_shapes=[pltpu.SemaphoreType.DMA(())],
        cost_estimate=pl.CostEstimate(
            flops=0, transcendentals=0, bytes_accessed=2 * B * F * itemsize),
    )(x2)


# --------------------------------------------------------------------------- #
# Variant 2: gridded lane-dense VMEM-staged copy (fusion template).
# --------------------------------------------------------------------------- #
def _copy_kernel(x_ref, o_ref):
    # Lane-dense tile copy: unmasked full-width vst, HBM-roofline bound.
    o_ref[...] = x_ref[...]


def _sublane_align(dtype) -> int:
    # Packed-sublane tiling: (8,128) for 4-byte, (16,128) bf16, (32,128) int8/uint8.
    return max(8, 32 // jnp.dtype(dtype).itemsize)


def _divisor_block(dim: int, pref: int, align: int) -> int:
    """Largest multiple of `align` <= pref dividing dim; full dim if small;
    else pref rounded to `align` (tail blocks then get masked -- still correct)."""
    if dim <= pref:
        return dim
    start = (pref // align) * align
    for b in range(start, 0, -align):
        if dim % b == 0:
            return b
    return max(align, start)


def pallas_flatten_tiled(x: jnp.ndarray,
                         block_batch: int = 256,
                         block_feat: int = 4096,
                         vmem_limit_bytes: int = 32 << 20) -> jnp.ndarray:
    """Flatten (B, *obs) -> (B, F) via a gridded, lane-dense Pallas memcpy."""
    B = x.shape[0]
    F = int(math.prod(x.shape[1:]))
    itemsize = jnp.dtype(x.dtype).itemsize
    sub_align = _sublane_align(x.dtype)

    # Pick a lane-dense 2-D view of the flat buffer.  All reshapes here are
    # metadata-only for a row-major contiguous observation.
    if F <= block_feat or F % 128 == 0:
        R, C = B, F
    elif (B * F) % 128 == 0:
        # e.g. F = 4*84*84 = 28224 (not a multiple of 128): re-tile the flat
        # B*F buffer so every j-strip is a full multiple of 128 lanes wide.
        C = _divisor_block(B * F, block_feat, 128)
        R = (B * F) // C
    else:
        R, C = B, F  # ragged lane tail: Pallas masks it (correct, slightly slower)

    x2 = jnp.reshape(x, (R, C))
    bR = _divisor_block(R, block_batch, sub_align)
    bC = _divisor_block(C, block_feat, 128)
    grid = (pl.cdiv(R, bR), pl.cdiv(C, bC))

    out2 = pl.pallas_call(
        _copy_kernel,
        out_shape=jax.ShapeDtypeStruct((R, C), x.dtype),
        grid=grid,
        in_specs=[pl.BlockSpec((bR, bC), lambda i, j: (i, j))],
        out_specs=pl.BlockSpec((bR, bC), lambda i, j: (i, j)),
        compiler_params=pltpu.CompilerParams(
            dimension_semantics=("parallel", "parallel"),
            vmem_limit_bytes=vmem_limit_bytes),
        cost_estimate=pl.CostEstimate(
            flops=0, transcendentals=0, bytes_accessed=2 * B * F * itemsize),
    )(x2)
    return jnp.reshape(out2, (B, F))


# --------------------------------------------------------------------------- #
# Module wrapper.
# --------------------------------------------------------------------------- #
class BaseFeaturesExtractor:
    """JAX/Pallas mirror of the PyTorch BaseFeaturesExtractor (flatten semantics).

    copy_mode:
      "none"  (default) -> jnp.reshape only: metadata-only, zero HBM traffic.
      "dma"   -> single whole-array HBM->HBM DMA (fastest materialized copy).
      "tiled" -> gridded lane-dense copy; template for fusing the flatten into a
                 downstream matmul/MLP kernel's LHS BlockSpec.
    """

    def __init__(self, observation_shape, features_dim: int = 0,
                 copy_mode: str = "none"):
        assert features_dim > 0
        obs_features = int(math.prod(observation_shape))
        assert features_dim == obs_features, (
            f"features_dim ({features_dim}) must equal prod(observation_shape) "
            f"({obs_features}) for the flatten extractor")
        assert copy_mode in ("none", "dma", "tiled")
        self._observation_shape = tuple(observation_shape)
        self._features_dim = int(features_dim)
        self._copy_mode = copy_mode

    @property
    def features_dim(self) -> int:
        return self._features_dim

    def forward(self, observations: jnp.ndarray) -> jnp.ndarray:
        # Base class is abstract in PyTorch; concrete behaviour = flatten extractor.
        if self._copy_mode == "dma":
            return pallas_flatten_dma(observations)
        if self._copy_mode == "tiled":
            return pallas_flatten_tiled(observations)
        # TODO(synk): when this extractor feeds a Pallas Linear/MLP kernel, express
        # the flatten via that kernel's A-operand BlockSpec instead of any copy.
        return jnp.reshape(observations, (observations.shape[0], -1))

    def __call__(self, observations: jnp.ndarray) -> jnp.ndarray:
        return self.forward(observations)


if __name__ == "__main__":
    key = jax.random.PRNGKey(0)
    B, C, H, W = 2, 4, 16, 16
    x = jax.random.normal(key, (B, C, H, W), dtype=jnp.float32)
    ref = jnp.reshape(x, (B, -1))

    # Default (fastest) path: metadata-only reshape, no kernel.
    extractor = BaseFeaturesExtractor((C, H, W), features_dim=C * H * W)
    out_none = jax.block_until_ready(extractor(x))
    assert out_none.shape == (B, extractor.features_dim)
    assert out_none.dtype == x.dtype
    assert jnp.array_equal(out_none, ref)

    # Pallas HBM->HBM DMA copy path.
    out_dma = jax.block_until_ready(pallas_flatten_dma(x))
    assert out_dma.shape == (B, C * H * W)
    assert out_dma.dtype == x.dtype
    assert jnp.array_equal(out_dma, ref)

    # Pallas tiled lane-dense copy path (fusion template).
    out_tiled = jax.block_until_ready(pallas_flatten_tiled(x))
    assert out_tiled.shape == (B, C * H * W)
    assert out_tiled.dtype == x.dtype
    assert jnp.array_equal(out_tiled, ref)

    # Native-dtype (uint8 Atari-style) observations: copied without any cast.
    x_u8 = jax.random.randint(key, (B, C, H, W), 0, 256).astype(jnp.uint8)
    out_u8 = jax.block_until_ready(pallas_flatten_dma(x_u8))
    assert out_u8.dtype == jnp.uint8
    assert jnp.array_equal(out_u8, jnp.reshape(x_u8, (B, -1)))

    print("KERNEL_OK")
</pallas_src>

<mosaic_0001>
module attributes {stable_mosaic.version = 11 : i64} {
  func.func @_dma_flatten_kernel(%arg0: memref<2x1024xf32, #tpu.memory_space<any>>, %arg1: memref<2x1024xf32, #tpu.memory_space<any>>, %arg2: memref<!tpu.dma_semaphore, #tpu.memory_space<semaphore_mem>>) attributes {dimension_semantics = [], scalar_prefetch = 0 : i64, scratch_operands = 1 : i64, tpu.core_type = #tpu.core_type<tc>} {
    tpu.enqueue_dma source(%arg0 : memref<2x1024xf32, #tpu.memory_space<any>>) target(%arg1 : memref<2x1024xf32, #tpu.memory_space<any>>) target_semaphore(%arg2 : memref<!tpu.dma_semaphore, #tpu.memory_space<semaphore_mem>>)
    tpu.wait_dma2 semaphore(%arg2 : memref<!tpu.dma_semaphore, #tpu.memory_space<semaphore_mem>>) src(%arg0 : memref<2x1024xf32, #tpu.memory_space<any>>) dst(%arg1 : memref<2x1024xf32, #tpu.memory_space<any>>)
    return
  }
}

</mosaic_0001>

<bundles_post_ra>
// kernel: tpu_custom_call.1
= control target key start
LH: loop header
LB: loop body
LE: loop exit
PB: predicated region body
PF: predicated region fallthrough
CT: control target
= control target key end

     0   :  { %s29_s6 = smov [#allocation2]   ;;  %s30_s7 = smov 131072   ;;  %s48_s0 = inlined_call_operand.hbm [shape: f32[2,1024], index: 0, kind: input, shape index: {}]   ;;  %s49_s1 = inlined_call_operand.hbm [shape: f32[2,1024], index: 1, kind: output, shape index: {}]  }
   0x1   :  { %s31_s8 = smov 0  }
   0x2   :  { %12 = dma.general %s48_s0, 256, %s49_s1, %s29_s6, %s30_s7, [#allocation4], %s31_s8, 0  }
   0x3   :  { %27 = dma.done.wait [#allocation2], 256 }
   0x4   :  { %28 = vsyncadd [#allocation2], 4294967040 }
   0x5   :  { %17 = vsyncmov [#allocation2] }
   0x8   :  { %s18_s13 = vpop.sfrf %17 }
   0x9   :  { %p23_p0 = scmp.ne.s32.totalorder %s18_s13, 0 }
   0xb   :  { %22 = shalt.err (%p23_p0)  }

</bundles_post_ra>
